<compile_context>
chip_gen: v5e
topology: v5e:2x2
jax: 0.10.0
libtpu: 0.0.40
codegen_flags: <defaults>
</compile_context>

<pallas_src>
import functools
import math

import jax
import jax.numpy as jnp
import numpy as np
from jax.experimental import pallas as pl
from jax.experimental.pallas import tpu as pltpu


# ------------------------------ fused kernel ---------------------------------
def _aux_conv_kernel(x_ref, m_ref, p_ref, o_ref, *, W):
    """3x3 conv + bias + ReLU + 1x1 conv + bias on a lane-flattened plane.

    x_ref, o_ref : (TB, H*W)   whole (H, W) plane on the lane axis
    m_ref        : (4, H*W)    float boundary-validity masks (wrapper consts)
    p_ref        : (12,) SMEM  [3x3 taps row-major (9), b_3x3, w_1x1, b_1x1]
    """
    HW = x_ref.shape[1]
    x = x_ref[...].astype(jnp.float32)
    m = m_ref[...]

    # In-kernel halo: dw = +/-1 neighbours via XLU lane rotations (runs in the
    # extended-op slot, overlapping the VPU FMAs); boundary columns zeroed.
    # Non-negative shifts: roll by HW-1 == roll by -1.
    x_p1 = pltpu.roll(x, shift=HW - 1, axis=1) * m[0:1, :]   # x[h, w+1]
    x_m1 = pltpu.roll(x, shift=1, axis=1) * m[1:2, :]        # x[h, w-1]

    # One weighted row-combination per kernel row (scalar*vector FMAs), then a
    # single +/-W roll per off-centre row: 4 rolls total, not 9 shifted planes.
    comb_m = p_ref[0] * x_m1 + p_ref[1] * x + p_ref[2] * x_p1   # kh = 0 (dh=-1)
    comb_0 = p_ref[3] * x_m1 + p_ref[4] * x + p_ref[5] * x_p1   # kh = 1 (dh= 0)
    comb_p = p_ref[6] * x_m1 + p_ref[7] * x + p_ref[8] * x_p1   # kh = 2 (dh=+1)

    acc = comb_0
    acc = acc + pltpu.roll(comb_m, shift=W, axis=1) * m[2:3, :]       # row h-1
    acc = acc + pltpu.roll(comb_p, shift=HW - W, axis=1) * m[3:4, :]  # row h+1

    acc = jnp.maximum(acc + p_ref[9], 0.0)                # 3x3 bias + ReLU
    o_ref[...] = (acc * p_ref[10] + p_ref[11]).astype(o_ref.dtype)  # 1x1 conv


# ------------------------------ tiling helper ---------------------------------
def _choose_block_batch(n, hw, requested):
    """VMEM-aware batch tile: a multiple of 8 (or the whole tiny batch)."""
    if n <= 8:
        return n                       # single full-batch block, no padding
    hw_padded = max(128, math.ceil(hw / 128) * 128)
    # ~10 live f32 copies of a (TB, HWp) plane per step: double-buffered
    # input + output blocks plus the shifted / combined temporaries.
    vmem_budget = 16 * 1024 * 1024     # safe headroom on v5e / v6e / v7x
    tb = vmem_budget // (10 * 4 * hw_padded)
    tb = min(tb, requested)
    tb = min(tb, math.ceil(n / 2))     # >= 2 grid steps -> both v7x TensorCores
    tb = max(8, (tb // 8) * 8)
    steps = math.ceil(n / tb)          # rebalance to minimize padded garbage rows
    return max(8, math.ceil(math.ceil(n / steps) / 8) * 8)


# ------------------------------ wrapper ---------------------------------------
@functools.partial(jax.jit, static_argnames=("block_batch",))
def aux_conv(features, params, *, block_batch=256):
    """features: (N, 1, H, W) NCHW array, like the PyTorch module."""
    N, C, H, W = features.shape
    assert C == 1, "AuxConv operates on single-channel feature maps"
    HW = H * W
    # TODO(synk): also tile the spatial axis for very large planes (H*W must
    # fit the per-step VMEM budget); typical aux-head maps fit comfortably.

    # Lane-dense layout: flatten (H, W) onto the lane axis (free, contiguous).
    x = features.reshape(N, HW)

    TB = _choose_block_batch(N, HW, block_batch)
    pad_n = (-N) % TB
    if pad_n:                                   # single pad op, batch axis only
        x = jnp.pad(x, ((0, pad_n), (0, 0)))
    Np = N + pad_n

    # Boundary-validity masks for the in-kernel halo (compile-time constants).
    pos = np.arange(HW, dtype=np.int64)
    col = pos % W
    masks = jnp.asarray(np.stack([
        col != W - 1,        # dw = +1 in bounds
        col != 0,            # dw = -1 in bounds
        pos >= W,            # dh = -1 in bounds (row != 0)
        pos < HW - W,        # dh = +1 in bounds (row != H-1)
    ]).astype(np.float32))

    # 12 scalars -> SMEM: 9 taps (row-major), conv3 bias, conv1 weight+bias.
    p = jnp.concatenate([
        params["conv3_w"].reshape(-1),
        params["conv3_b"].reshape(-1),
        params["conv1_w"].reshape(-1),
        params["conv1_b"].reshape(-1),
    ]).astype(jnp.float32)

    itemsize = np.dtype(features.dtype).itemsize
    cost = pl.CostEstimate(
        flops=21 * Np * HW,
        bytes_accessed=2 * Np * HW * itemsize + 4 * HW * 4 + 12 * 4,
        transcendentals=0)

    out = pl.pallas_call(
        functools.partial(_aux_conv_kernel, W=W),
        out_shape=jax.ShapeDtypeStruct((Np, HW), features.dtype),
        grid=(Np // TB,),
        in_specs=[
            pl.BlockSpec((TB, HW), lambda i: (i, 0)),
            pl.BlockSpec((4, HW), lambda i: (0, 0)),
            pl.BlockSpec(memory_space=pltpu.MemorySpace.SMEM),
        ],
        out_specs=pl.BlockSpec((TB, HW), lambda i: (i, 0)),
        compiler_params=pltpu.CompilerParams(
            dimension_semantics=("parallel",),
            vmem_limit_bytes=32 * 1024 * 1024),
        cost_estimate=cost,
    )(x, masks, p)

    return out[:N].reshape(N, 1, H, W)


# ------------------------------ demo ------------------------------------------
if __name__ == "__main__":
    batch, H, W = 2, 16, 16

    key = jax.random.PRNGKey(0)
    kx, k1, k2, k3, k4 = jax.random.split(key, 5)

    features = jax.random.normal(kx, (batch, 1, H, W), dtype=jnp.float32)

    def _uniform(k, shape, fan_in):
        bound = 1.0 / (float(fan_in) ** 0.5)
        return jax.random.uniform(k, shape, jnp.float32, -bound, bound)

    params = {
        "conv3_w": _uniform(k1, (3, 3), 9.0),   # Conv2d(1,1,3) weight (squeezed)
        "conv3_b": _uniform(k2, (1,), 9.0),
        "conv1_w": _uniform(k3, (1,), 1.0),     # Conv2d(1,1,1) weight (squeezed)
        "conv1_b": _uniform(k4, (1,), 1.0),
    }

    out = aux_conv(features, params)
    jax.block_until_ready(out)
    assert out.shape == (batch, 1, H, W)

    # Independent reference via XLA conv (cross-correlation, same as PyTorch).
    ref = jax.lax.conv_general_dilated(
        features, params["conv3_w"].reshape(1, 1, 3, 3),
        window_strides=(1, 1), padding=((1, 1), (1, 1)),
        dimension_numbers=("NCHW", "OIHW", "NCHW"),
        precision=jax.lax.Precision.HIGHEST)
    ref = jnp.maximum(ref + params["conv3_b"][0], 0.0)
    ref = ref * params["conv1_w"][0] + params["conv1_b"][0]
    assert jnp.allclose(out, ref, atol=1e-5, rtol=1e-5)

    print("KERNEL_OK")
</pallas_src>

<mosaic_0001>
module attributes {stable_mosaic.version = 11 : i64} {
  func.func @_aux_conv_kernel(%arg0: i32, %arg1: memref<2x256xf32, #tpu.memory_space<vmem>>, %arg2: memref<4x256xf32, #tpu.memory_space<vmem>>, %arg3: memref<12xf32, #tpu.memory_space<smem>>, %arg4: memref<2x256xf32, #tpu.memory_space<vmem>>) attributes {dimension_semantics = [#tpu.dimension_semantics<parallel>], iteration_bounds = array<i64: 1>, scalar_prefetch = 0 : i64, scratch_operands = 0 : i64, tpu.core_type = #tpu.core_type<tc>, window_params = [{transform_indices = @transform_0, window_bounds = array<i64: 2, 256>}, {pipeline_mode = #tpu.pipeline_mode<synchronous>, transform_indices = @transform_1, window_bounds = array<i64: 4, 256>}, {transform_indices = @transform_2, window_bounds = array<i64: 12>}, {transform_indices = @transform_3, window_bounds = array<i64: 2, 256>}]} {
    %c0 = arith.constant 0 : index
    %c0_0 = arith.constant 0 : index
    %0 = vector.load %arg1[%c0, %c0_0] : memref<2x256xf32, #tpu.memory_space<vmem>>, vector<2x256xf32>
    %c0_1 = arith.constant 0 : index
    %c0_2 = arith.constant 0 : index
    %1 = vector.load %arg2[%c0_1, %c0_2] : memref<4x256xf32, #tpu.memory_space<vmem>>, vector<4x256xf32>
    %c255_i32 = arith.constant 255 : i32
    %2 = tpu.dynamic_rotate %0 by %c255_i32 dim 1 : vector<2x256xf32>, i32 -> vector<2x256xf32>
    %3 = vector.extract_strided_slice %1 {offsets = [0, 0], sizes = [1, 256], strides = [1, 1]} : vector<4x256xf32> to vector<1x256xf32>
    %4 = vector.broadcast %3 : vector<1x256xf32> to vector<2x256xf32>
    %5 = arith.mulf %2, %4 : vector<2x256xf32>
    %c1_i32 = arith.constant 1 : i32
    %6 = tpu.dynamic_rotate %0 by %c1_i32 dim 1 : vector<2x256xf32>, i32 -> vector<2x256xf32>
    %7 = vector.extract_strided_slice %1 {offsets = [1, 0], sizes = [1, 256], strides = [1, 1]} : vector<4x256xf32> to vector<1x256xf32>
    %8 = vector.broadcast %7 : vector<1x256xf32> to vector<2x256xf32>
    %9 = arith.mulf %6, %8 : vector<2x256xf32>
    %c0_3 = arith.constant 0 : index
    %10 = memref.load %arg3[%c0_3] : memref<12xf32, #tpu.memory_space<smem>>
    %11 = vector.broadcast %10 : f32 to vector<2x256xf32>
    %12 = arith.mulf %11, %9 : vector<2x256xf32>
    %c1 = arith.constant 1 : index
    %13 = memref.load %arg3[%c1] : memref<12xf32, #tpu.memory_space<smem>>
    %14 = vector.broadcast %13 : f32 to vector<2x256xf32>
    %15 = arith.mulf %14, %0 : vector<2x256xf32>
    %16 = arith.addf %12, %15 : vector<2x256xf32>
    %c2 = arith.constant 2 : index
    %17 = memref.load %arg3[%c2] : memref<12xf32, #tpu.memory_space<smem>>
    %18 = vector.broadcast %17 : f32 to vector<2x256xf32>
    %19 = arith.mulf %18, %5 : vector<2x256xf32>
    %20 = arith.addf %16, %19 : vector<2x256xf32>
    %c3 = arith.constant 3 : index
    %21 = memref.load %arg3[%c3] : memref<12xf32, #tpu.memory_space<smem>>
    %22 = vector.broadcast %21 : f32 to vector<2x256xf32>
    %23 = arith.mulf %22, %9 : vector<2x256xf32>
    %c4 = arith.constant 4 : index
    %24 = memref.load %arg3[%c4] : memref<12xf32, #tpu.memory_space<smem>>
    %25 = vector.broadcast %24 : f32 to vector<2x256xf32>
    %26 = arith.mulf %25, %0 : vector<2x256xf32>
    %27 = arith.addf %23, %26 : vector<2x256xf32>
    %c5 = arith.constant 5 : index
    %28 = memref.load %arg3[%c5] : memref<12xf32, #tpu.memory_space<smem>>
    %29 = vector.broadcast %28 : f32 to vector<2x256xf32>
    %30 = arith.mulf %29, %5 : vector<2x256xf32>
    %31 = arith.addf %27, %30 : vector<2x256xf32>
    %c6 = arith.constant 6 : index
    %32 = memref.load %arg3[%c6] : memref<12xf32, #tpu.memory_space<smem>>
    %33 = vector.broadcast %32 : f32 to vector<2x256xf32>
    %34 = arith.mulf %33, %9 : vector<2x256xf32>
    %c7 = arith.constant 7 : index
    %35 = memref.load %arg3[%c7] : memref<12xf32, #tpu.memory_space<smem>>
    %36 = vector.broadcast %35 : f32 to vector<2x256xf32>
    %37 = arith.mulf %36, %0 : vector<2x256xf32>
    %38 = arith.addf %34, %37 : vector<2x256xf32>
    %c8 = arith.constant 8 : index
    %39 = memref.load %arg3[%c8] : memref<12xf32, #tpu.memory_space<smem>>
    %40 = vector.broadcast %39 : f32 to vector<2x256xf32>
    %41 = arith.mulf %40, %5 : vector<2x256xf32>
    %42 = arith.addf %38, %41 : vector<2x256xf32>
    %c16_i32 = arith.constant 16 : i32
    %43 = tpu.dynamic_rotate %20 by %c16_i32 dim 1 : vector<2x256xf32>, i32 -> vector<2x256xf32>
    %44 = vector.extract_strided_slice %1 {offsets = [2, 0], sizes = [1, 256], strides = [1, 1]} : vector<4x256xf32> to vector<1x256xf32>
    %45 = vector.broadcast %44 : vector<1x256xf32> to vector<2x256xf32>
    %46 = arith.mulf %43, %45 : vector<2x256xf32>
    %47 = arith.addf %31, %46 : vector<2x256xf32>
    %c240_i32 = arith.constant 240 : i32
    %48 = tpu.dynamic_rotate %42 by %c240_i32 dim 1 : vector<2x256xf32>, i32 -> vector<2x256xf32>
    %49 = vector.extract_strided_slice %1 {offsets = [3, 0], sizes = [1, 256], strides = [1, 1]} : vector<4x256xf32> to vector<1x256xf32>
    %50 = vector.broadcast %49 : vector<1x256xf32> to vector<2x256xf32>
    %51 = arith.mulf %48, %50 : vector<2x256xf32>
    %52 = arith.addf %47, %51 : vector<2x256xf32>
    %c9 = arith.constant 9 : index
    %53 = memref.load %arg3[%c9] : memref<12xf32, #tpu.memory_space<smem>>
    %54 = vector.broadcast %53 : f32 to vector<2x256xf32>
    %55 = arith.addf %52, %54 : vector<2x256xf32>
    %cst = arith.constant 0.000000e+00 : f32
    %56 = vector.broadcast %cst : f32 to vector<2x256xf32>
    %57 = arith.maximumf %55, %56 : vector<2x256xf32>
    %c10 = arith.constant 10 : index
    %58 = memref.load %arg3[%c10] : memref<12xf32, #tpu.memory_space<smem>>
    %59 = vector.broadcast %58 : f32 to vector<2x256xf32>
    %60 = arith.mulf %57, %59 : vector<2x256xf32>
    %c11 = arith.constant 11 : index
    %61 = memref.load %arg3[%c11] : memref<12xf32, #tpu.memory_space<smem>>
    %62 = vector.broadcast %61 : f32 to vector<2x256xf32>
    %63 = arith.addf %60, %62 : vector<2x256xf32>
    %c0_4 = arith.constant 0 : index
    %c0_5 = arith.constant 0 : index
    %64 = vector.load %arg4[%c0_4, %c0_5] : memref<2x256xf32, #tpu.memory_space<vmem>>, vector<2x256xf32>
    tpu.vector_store %arg4[%c0_4, %c0_5], %63 {strides = array<i32>} : memref<2x256xf32, #tpu.memory_space<vmem>>, vector<2x256xf32>,
    return
  }
  func.func @transform_0(%arg0: i32) -> (i32, i32) {
    %c0_i32 = arith.constant 0 : i32
    %c0_i32_0 = arith.constant 0 : i32
    return %arg0, %c0_i32 : i32, i32
  }
  func.func @transform_1(%arg0: i32) -> (i32, i32) {
    %c0_i32 = arith.constant 0 : i32
    %c0_i32_0 = arith.constant 0 : i32
    %c0_i32_1 = arith.constant 0 : i32
    return %c0_i32, %c0_i32_0 : i32, i32
  }
  func.func @transform_2(%arg0: i32) -> i32 {
    %c0_i32 = arith.constant 0 : i32
    %c0_i32_0 = arith.constant 0 : i32
    return %c0_i32 : i32
  }
  func.func @transform_3(%arg0: i32) -> (i32, i32) {
    %c0_i32 = arith.constant 0 : i32
    %c0_i32_0 = arith.constant 0 : i32
    return %arg0, %c0_i32 : i32, i32
  }
}

</mosaic_0001>

<bundles_post_ra>
// kernel: aux_conv.1
= control target key start
LH: loop header
LB: loop body
LE: loop exit
PB: predicated region body
PF: predicated region fallthrough
CT: control target
= control target key end

     0   :  { %8 = vsyncpa [#allocation3], 0  ;;  %s226_s15 = smov [#allocation2]   ;;  %s300_s0 = inlined_call_operand.vmem [shape: f32[2,256], index: 0, kind: input, shape index: {}]   ;;  %s301_s1 = inlined_call_operand.vmem [shape: f32[4,256], index: 1, kind: input, shape index: {}]   ;;  %s302_s2 = inlined_call_operand.vmem [shape: f32[12], index: 2, kind: input, shape index: {}]   ;;  %s303_s3 = inlined_call_operand.vmem [shape: f32[2,256], index: 3, kind: output, shape index: {}]  }
   0x1   :  { %s18_s14 = sshll.u32 %s302_s2, 4  ;;  %s19_s14 = int_to_ptr.vmem [resolvable:$true] %s18_s14 }
   0x2   :  { %21 = dma.vmem_to_smem %s19_s14, 16, %s226_s15, [#allocation3]  }
   0x3   :  { %224 = dma.done.wait [#allocation3], 16  }
   0x4   :  { %225 = vsyncadd [#allocation3], 4294967280 }
   0x5   :  { %26 = sfence }
   0x6   :  { %v27_v0 = vld [vmem:[%s300_s0] sm:$0xf]  ;;  %s196_s18 = sld [smem:[#allocation2 + $0x1]]  ;;  %s227_s19 = smov 127   ;;  %v39_v16 = vlaneseq  ;;  %vm187_vm4 = vcmask 1041408  }
   0x7   :  { %30 = vst [vmem:[#allocation1] ss:$4 sm:$0xff] %v27_v0  ;;  %s199_s20 = sld [smem:[#allocation2 + $0x4]]  ;;  %s228_s2 = smov 1   ;;  %v262_v17 = vld [vmem:[%s301_s1] sm:$0xff] }
   0x8   :  { %s202_s21 = sld [smem:[#allocation2 + $0x7]]  ;;  %v264_v18 = vand.u32 127, %v39_v16  ;;  %v45_v19 = vperm.slane %v262_v17, 0  ;;  %v46_v21 = vperm.slane %v262_v17, 4  ;;  %v65_v23 = vperm.slane %v262_v17, 1  ;;  %s229_s28 = smov 112  }
   0x9   :  { %s266_s23 = sld [smem:[#allocation2 + $0x5]]  ;;  %v66_v24 = vperm.slane %v262_v17, 5  ;;  %s230_s29 = smov 16  }
   0xa   :  { %s269_s24 = sld [smem:[#allocation2 + $0x8]]  ;;  %vm41_vm0 = vcmp.lt.s32.totalorder %v264_v18, 127  ;;  %v49_v25 = vperm.slane %v45_v19, 0  ;;  %v50_v27 = vperm.slane %v46_v21, 0  ;;  %vm62_vm1 = vcmp.lt.s32.totalorder %v264_v18, 1 }
   0xb   :  { %s271_s25 = sld [smem:[#allocation2 + $0x3]]  ;;  %v69_v29 = vperm.slane %v65_v23, 1  ;;  %v70_v30 = vperm.slane %v66_v24, 1  ;;  %vm140_vm2 = vcmp.lt.s32.totalorder %v264_v18, 16  ;;  %vm157_vm3 = vcmp.lt.s32.totalorder %v264_v18, 112 }
   0xc   :  { %v78_v3 = vstv %s196_s18  ;;  %s275_s1 = sld [smem:[#allocation2 + $0x6]] }
   0xd   :  { %v79_v4 = vmul.f32 %v78_v3, %v27_v0  ;;  %v99_v7 = vstv %s199_s20  ;;  %s279_s26 = sld [smem:[#allocation2]] }
   0xe   :  { %v31_v1 = vld.sshfl [vmem:[#allocation1] sm:$0xff pattern:$0x73625140]  ;;  %v32_v2 = vld.sshfl [vmem:[#allocation1 + $0x8] sm:$0xff pattern:$0x73625140]  ;;  %v100_v8 = vmul.f32 %v99_v7, %v27_v0  ;;  %v120_v11 = vstv %s202_s21 }
   0xf   :  { %35 = vrot.lane.b32.xlu1 %v31_v1, %s227_s19  ;;  %53 = vst [vmem:[#allocation1] ss:$4 sm:$0xff] %v27_v0  ;;  %v121_v12 = vmul.f32 %v120_v11, %v27_v0  ;;  %s281_s27 = sld [smem:[#allocation2 + $0x2]]  ;;  %v110_v32 = vstv %s266_s23  ;;  %v143_v7 = vperm.slane %v262_v17, 2 }
  0x10   :  { %v131_v41 = vstv %s269_s24  ;;  %s204_s30 = sld [smem:[#allocation2 + $0x9]] }
  0x11   :  { %v95_v33 = vstv %s271_s25  ;;  %v147_v11 = vperm.slane %v143_v7, 2  ;;  %s205_s4 = sld [smem:[#allocation2 + $0xa]] }
  0x12   :  { %v116_v36 = vstv %s275_s1  ;;  %s206_s5 = sld [smem:[#allocation2 + $0xb]] }
  0x13   :  { %v74_v42 = vstv %s279_s26 }
  0x15   :  { %v89_v46 = vstv %s281_s27 }
  0x16   :  { %v54_v5 = vld.sshfl [vmem:[#allocation1] sm:$0xff pattern:$0x73625140]  ;;  %v55_v6 = vld.sshfl [vmem:[#allocation1 + $0x8] sm:$0xff pattern:$0x73625140] }
  0x17   :  { %58 = vrot.lane.b32.xlu0 %v54_v5, %s228_s2  ;;  %37 = vrot.lane.b32.xlu1 %v32_v2, %s227_s19  ;;  %81 = vst [vmem:[#allocation1] ss:$4 sm:$0xff] %v79_v4  ;;  %v177_v18 = vstv %s205_s4 }
  0x1e   :  { %v82_v9 = vld.sshfl [vmem:[#allocation1] sm:$0xff pattern:$0x73625140]  ;;  %v257_v10 = vld.sshfl [vmem:[#allocation1 + $0x8] sm:$0xff pattern:$0x73625140] }
  0x1f   :  { %60 = vrot.lane.b32.xlu0 %v55_v6, %s228_s2  ;;  %102 = vst [vmem:[#allocation1] ss:$4 sm:$0xff] %v100_v8  ;;  %v144_v8 = vperm.slane %v262_v17, 6 }
  0x26   :  { %v103_v13 = vld.sshfl [vmem:[#allocation1] sm:$0xff pattern:$0x73625140]  ;;  %v104_v14 = vld.sshfl [vmem:[#allocation1 + $0x8] sm:$0xff pattern:$0x73625140] }
  0x27   :  { %123 = vst [vmem:[#allocation1] ss:$4 sm:$0xff] %v121_v12  ;;  %v148_v12 = vperm.slane %v144_v8, 2 }
  0x2e   :  { %v125_v44 = vld.sshfl [vmem:[#allocation1 + $0x8] sm:$0xff pattern:$0x73625140]  ;;  %v124_v45 = vld.sshfl [vmem:[#allocation1] sm:$0xff pattern:$0x73625140] }
  0x81   :  { %v36_v15 = vpop.permute.xlu1 %35 }
  0x89   :  { %v59_v20 = vpop.permute.xlu0 %58  ;;  %v38_v22 = vpop.permute.xlu1 %37 }
  0x8a   :  { %v42_v26 = vsel %vm41_vm0, %v36_v15, %v38_v22  ;;  %v43_v28 = vsel %vm41_vm0, %v38_v22, %v36_v15 }
  0x8b   :  { %v51_v31 = vmul.f32 %v49_v25, %v42_v26  ;;  %v52_v35 = vmul.f32 %v50_v27, %v43_v28 }
  0x8d   :  { %v111_v43 = vmul.f32 %v110_v32, %v51_v31  ;;  %v112_v51 = vmul.f32 %v110_v32, %v52_v35  ;;  %v133_v52 = vmul.f32 %v131_v41, %v52_v35  ;;  %v132_v53 = vmul.f32 %v131_v41, %v51_v31 }
  0x8e   :  { %v90_v60 = vmul.f32 %v89_v46, %v51_v31  ;;  %v91_v4 = vmul.f32 %v89_v46, %v52_v35 }
  0x91   :  { %v61_v34 = vpop.permute.xlu0 %60 }
  0x92   :  { %v63_v37 = vsel %vm62_vm1, %v59_v20, %v61_v34  ;;  %v64_v38 = vsel %vm62_vm1, %v61_v34, %v59_v20 }
  0x93   :  { %v71_v39 = vmul.f32 %v69_v29, %v64_v38  ;;  %v72_v40 = vmul.f32 %v70_v30, %v63_v37 }
  0x95   :  { %v96_v47 = vmul.f32 %v95_v33, %v71_v39  ;;  %v97_v48 = vmul.f32 %v95_v33, %v72_v40  ;;  %v117_v49 = vmul.f32 %v116_v36, %v71_v39  ;;  %v118_v50 = vmul.f32 %v116_v36, %v72_v40 }
  0x96   :  { %v75_v54 = vmul.f32 %v74_v42, %v71_v39  ;;  %v76_v1 = vmul.f32 %v74_v42, %v72_v40  ;;  %v181_v36 = vstv %s206_s5 }
  0x97   :  { %v129_v55 = vadd.f32 %v125_v44, %v118_v50  ;;  %v128_v56 = vadd.f32 %v124_v45, %v117_v49  ;;  %v107_v57 = vadd.f32 %v103_v13, %v96_v47  ;;  %v108_v58 = vadd.f32 %v104_v14, %v97_v48 }
  0x98   :  { %v86_v59 = vadd.f32 %v82_v9, %v75_v54  ;;  %v87_v3 = vadd.f32 %v257_v10, %v76_v1  ;;  %v160_v13 = vperm.slane %v262_v17, 3  ;;  %v161_v14 = vperm.slane %v262_v17, 7 }
  0x99   :  { %v135_v61 = vadd.f32 %v133_v52, %v129_v55  ;;  %v134_v62 = vadd.f32 %v132_v53, %v128_v56  ;;  %v113_v63 = vadd.f32 %v111_v43, %v107_v57  ;;  %v114_v0 = vadd.f32 %v112_v51, %v108_v58 }
  0x9a   :  { %v92_v2 = vadd.f32 %v90_v60, %v86_v59  ;;  %v93_v5 = vadd.f32 %v91_v4, %v87_v3  ;;  %v164_v20 = vperm.slane %v160_v13, 3  ;;  %v165_v21 = vperm.slane %v161_v14, 3 }
  0x9b   :  { %155 = vrot.lane.b32.xlu1 %v135_v61, %s229_s28  ;;  %153 = vrot.lane.b32.xlu0 %v134_v62, %s229_s28  ;;  %v171_v17 = vstv %s204_s30 }
  0x9c   :  { %136 = vrot.lane.b32.xlu2 %v92_v2, %s230_s29 }
  0xa4   :  { %138 = vrot.lane.b32.xlu2 %v93_v5, %s230_s29 }
  0xf6   :  { %v137_v6 = vpop.permute.xlu2 %136 }
  0xfe   :  { %v139_v9 = vpop.permute.xlu2 %138 }
  0xff   :  { %v141_v15 = vsel %vm140_vm2, %v137_v6, %v139_v9  ;;  %v142_v16 = vsel %vm140_vm2, %v139_v9, %v137_v6 }
 0x100   :  { %v149_v10 = vmul.f32 %v147_v11, %v142_v16  ;;  %v150_v19 = vmul.f32 %v148_v12, %v141_v15 }
 0x102   :  { %v151_v26 = vadd.f32 %v149_v10, %v113_v63  ;;  %v152_v27 = vadd.f32 %v150_v19, %v114_v0 }
 0x10d   :  { %v156_v22 = vpop.permute.xlu1 %155  ;;  %v154_v23 = vpop.permute.xlu0 %153 }
 0x10e   :  { %v158_v24 = vsel %vm157_vm3, %v154_v23, %v156_v22  ;;  %v159_v25 = vsel %vm157_vm3, %v156_v22, %v154_v23 }
 0x10f   :  { %v166_v28 = vmul.f32 %v164_v20, %v158_v24  ;;  %v167_v29 = vmul.f32 %v165_v21, %v159_v25 }
 0x111   :  { %v168_v30 = vadd.f32 %v166_v28, %v151_v26  ;;  %v169_v31 = vadd.f32 %v167_v29, %v152_v27 }
 0x113   :  { %v172_v32 = vadd.f32 %v171_v17, %v168_v30  ;;  %v173_v33 = vadd.f32 %v171_v17, %v169_v31 }
 0x115   :  { %v174_v34 = vmax.f32 %v172_v32, 0.0  ;;  %v175_v35 = vmax.f32 %v173_v33, 0.0 }
 0x117   :  { %v178_v37 = vmul.f32 %v177_v18, %v174_v34  ;;  %v179_v38 = vmul.f32 %v177_v18, %v175_v35 }
 0x119   :  { %v183_v39 = vadd.f32 %v181_v36, %v179_v38  ;;  %v182_v40 = vadd.f32 %v181_v36, %v178_v37 }
 0x11b   :  { %v186_v41 = vrot.slane %v183_v39, 6 }
 0x11d   :  { %v188_v42 = vsel %vm187_vm4, %v182_v40, %v186_v41 }
 0x11e   :  { %190 = vst [vmem:[%s303_s3] sm:$0xf] %v188_v42 }
 0x11f   :  { %195 = vsyncpa [#allocation3], 1 }

</bundles_post_ra>
